<compile_context>
chip_gen: v7x
topology: tpu7x:2x2x1
jax: 0.10.0
libtpu: 0.0.40
codegen_flags: <defaults>
</compile_context>

<pallas_src>
import math
from functools import partial

import jax
import jax.numpy as jnp
from jax import lax
from jax.experimental import pallas as pl
from jax.experimental.pallas import tpu as pltpu

_MIN_STD = 1e-5


def _round_up(x: int, m: int) -> int:
    return ((x + m - 1) // m) * m


# ---------------------------------------------------------------------------
# Kernel body: fused  suff = (ReLU(x @ W1 + b1)) @ W2 + b2  on one row-tile,
# with the DiagGaussian scale preprocessing (softplus + min_std) applied in-place
# to the log-var columns [out_dim, suff_dim) (weights are pre-permuted so those
# columns are contiguous).
# ---------------------------------------------------------------------------
def _mlp_kernel(x_ref, w1_ref, b1_ref, w2_ref, b2_ref, o_ref, *,
                compute_dtype, out_dim, suff_dim):
    # First GEMM on the MXU, f32 accumulation.
    h = jnp.dot(x_ref[...], w1_ref[...], preferred_element_type=jnp.float32)
    # Bias + ReLU on the f32 accumulator (VPU).
    h = jnp.maximum(h + b1_ref[...], 0.0)
    # Deliberate cast of MXU inputs to the chosen compute dtype (NOT w2's dtype).
    o = jnp.dot(h.astype(compute_dtype), w2_ref[...],
                preferred_element_type=jnp.float32)
    o = o + b2_ref[...]

    if suff_dim > out_dim:
        # DiagGaussian: columns [out_dim, suff_dim) hold log-var -> softplus + min_std.
        # softplus(x) = max(x, 0) + log(1 + exp(-|x|))   (EUP exp/log, VPU rest).
        sp = (jnp.maximum(o, 0.0)
              + jnp.log(1.0 + jnp.exp(-jnp.abs(o)))
              + jnp.float32(_MIN_STD))
        lane = lax.broadcasted_iota(jnp.int32, o.shape, 1)
        is_scale = (lane >= out_dim) & (lane < suff_dim)
        o = jnp.where(is_scale, sp, o)

    o_ref[...] = o.astype(o_ref.dtype)


# ---------------------------------------------------------------------------
# Pallas wrapper: row-tiled grid, weights resident, lane-dense padded features.
# ---------------------------------------------------------------------------
def _mlp_pallas(x2d, w1p, b1p, w2p, b2p, *, compute_dtype, out_dim, suff_dim):
    """x2d: (N, in_dim) unpadded; w1p/(b1p)/w2p/(b2p): feature-padded params."""
    n_rows, in_dim = x2d.shape
    in_p, hid_p = w1p.shape
    out_p = w2p.shape[1]
    cd_bytes = jnp.dtype(compute_dtype).itemsize

    # --- row tile: biggest tile that fits the 32 MiB scoped-VMEM default -----
    fixed_bytes = (in_p * hid_p + hid_p * out_p) * cd_bytes + (hid_p + out_p) * 4
    per_row_bytes = 2 * (in_p * cd_bytes + out_p * 4)          # double-buffered x & out
    budget = 32 * 1024 * 1024
    tm_budget = max(8, ((budget - fixed_bytes) // per_row_bytes) // 8 * 8)
    tm = int(min(512, _round_up(n_rows, 8), tm_budget))
    n_pad = _round_up(n_rows, tm)

    # --- pad rows + features, cast MXU inputs to compute_dtype ---------------
    x_pad = jnp.zeros((n_pad, in_p), compute_dtype)
    x_pad = x_pad.at[:n_rows, :in_dim].set(x2d.astype(compute_dtype))

    grid = (pl.cdiv(n_pad, tm),)
    flops = 2 * n_pad * (in_p * hid_p + hid_p * out_p)
    transcendentals = 2 * n_pad * out_p if suff_dim > out_dim else 0
    bytes_accessed = (n_pad * in_p * cd_bytes                       # x
                      + (in_p * hid_p + hid_p * out_p) * cd_bytes   # weights
                      + (hid_p + out_p) * 4                         # biases
                      + n_pad * out_p * 4)                          # output (f32)

    out_pad = pl.pallas_call(
        partial(_mlp_kernel, compute_dtype=compute_dtype,
                out_dim=out_dim, suff_dim=suff_dim),
        out_shape=jax.ShapeDtypeStruct((n_pad, out_p), jnp.float32),
        grid=grid,
        in_specs=[
            pl.BlockSpec((tm, in_p), lambda i: (i, 0)),       # x: pipelined per tile
            pl.BlockSpec((in_p, hid_p), lambda i: (0, 0)),    # W1: resident
            pl.BlockSpec((1, hid_p), lambda i: (0, 0)),       # b1: resident (padded tile)
            pl.BlockSpec((hid_p, out_p), lambda i: (0, 0)),   # W2: resident
            pl.BlockSpec((1, out_p), lambda i: (0, 0)),       # b2: resident (padded tile)
        ],
        out_specs=pl.BlockSpec((tm, out_p), lambda i: (i, 0)),
        compiler_params=pltpu.CompilerParams(
            dimension_semantics=("parallel",)),                # v7x: shard rows across TCs
        cost_estimate=pl.CostEstimate(
            flops=int(flops), transcendentals=int(transcendentals),
            bytes_accessed=int(bytes_accessed)),
    )(x_pad, w1p, b1p, w2p, b2p)

    return out_pad[:n_rows]      # still feature-padded (out_p); caller slices


# ---------------------------------------------------------------------------
# Parameter init (mirrors weights_init: kaiming_uniform relu/fan_in, zero bias).
# Feature dims are zero-padded to 128 once, here. For DiagGaussian, W2/b2 columns
# are additionally permuted 'b (z p) -> b (p z)' so the kernel output already has
# loc in [0, out_dim) and log_var in [out_dim, 2*out_dim) (no strided de-interleave
# on the hot path).
# ---------------------------------------------------------------------------
def init_cond_dist_params(key, in_dim, hid_dim, out_dim, family,
                          compute_dtype=jnp.float32):
    n_param = 2 if family == "diaggaussian" else 1
    suff_dim = out_dim * n_param
    k1, k2 = jax.random.split(key)

    def kaiming_uniform(k, fan_in, shape):
        bound = math.sqrt(2.0) * math.sqrt(3.0 / fan_in)     # relu gain, fan_in
        return jax.random.uniform(k, shape, jnp.float32, -bound, bound)

    w1 = kaiming_uniform(k1, in_dim, (in_dim, hid_dim))
    w2 = kaiming_uniform(k2, hid_dim, (hid_dim, suff_dim))
    b1 = jnp.zeros((hid_dim,), jnp.float32)
    b2 = jnp.zeros((suff_dim,), jnp.float32)
    raw_params = (w1, b1, w2, b2)                     # interleaved layout (reference)

    # De-interleave column permutation: [loc0,lv0,loc1,lv1,...] -> [loc...,lv...].
    if n_param == 2:
        perm = jnp.concatenate([jnp.arange(0, suff_dim, 2),
                                jnp.arange(1, suff_dim, 2)])
    else:
        perm = jnp.arange(suff_dim)
    w2_d = w2[:, perm]
    b2_d = b2[perm]

    in_p = _round_up(in_dim, 128)
    hid_p = _round_up(hid_dim, 128)
    out_p = _round_up(suff_dim, 128)
    w1p = jnp.zeros((in_p, hid_p), compute_dtype).at[:in_dim, :hid_dim].set(
        w1.astype(compute_dtype))
    w2p = jnp.zeros((hid_p, out_p), compute_dtype).at[:hid_dim, :suff_dim].set(
        w2_d.astype(compute_dtype))
    b1p = jnp.zeros((1, hid_p), jnp.float32).at[0, :hid_dim].set(b1)   # epilogue stays f32
    b2p = jnp.zeros((1, out_p), jnp.float32).at[0, :suff_dim].set(b2_d)
    padded_params = (w1p, b1p, w2p, b2p)

    cfg = dict(in_dim=in_dim, hid_dim=hid_dim, out_dim=out_dim,
               suff_dim=suff_dim, n_param=n_param, family=family,
               compute_dtype=compute_dtype)
    return padded_params, raw_params, cfg


def cond_dist_forward(x, padded_params, cfg):
    """Full CondDist.forward: batch_flatten -> fused MLP+Family preprocess (Pallas)."""
    w1p, b1p, w2p, b2p = padded_params
    lead = x.shape[:-1]
    out_dim, suff_dim = cfg["out_dim"], cfg["suff_dim"]
    x2d = x.reshape(-1, x.shape[-1])                               # batch_flatten
    y2d = _mlp_pallas(x2d, w1p, b1p, w2p, b2p,
                      compute_dtype=cfg["compute_dtype"],
                      out_dim=out_dim, suff_dim=suff_dim)          # (N, out_p) f32
    loc = y2d[:, :out_dim].reshape(*lead, out_dim)                 # batch_unflatten
    if cfg["family"] == "deterministic":
        return {"family": "deterministic", "loc": loc}
    scale = y2d[:, out_dim:suff_dim].reshape(*lead, out_dim)       # already softplus+min_std
    return {"family": "diaggaussian", "loc": loc, "scale": scale}


# ---------------------------------------------------------------------------
# Pure-JAX reference (f32 everywhere, interleaved suff_param layout) for checks.
# ---------------------------------------------------------------------------
def cond_dist_reference(x, raw_params, cfg):
    w1, b1, w2, b2 = raw_params
    lead = x.shape[:-1]
    x2d = x.reshape(-1, x.shape[-1]).astype(jnp.float32)
    h = jnp.maximum(x2d @ w1 + b1, 0.0)
    suff = (h @ w2 + b2).reshape(*lead, cfg["suff_dim"])
    if cfg["family"] == "deterministic":
        return {"family": "deterministic", "loc": suff}
    s = suff.reshape(*lead, cfg["out_dim"], 2)        # 'b (z p) -> b z p', p=2
    loc = s[..., 0]
    scale = jax.nn.softplus(s[..., 1]) + _MIN_STD
    return {"family": "diaggaussian", "loc": loc, "scale": scale}


if __name__ == "__main__":
    # Shapes implied by the module: x: [batch, *in_shape] with trailing dim = in_dim.
    in_dim, hid_dim, out_dim = 16, 32, 8
    batch, seq = 2, 8
    family = "diaggaussian"

    key = jax.random.PRNGKey(0)
    kx, kp = jax.random.split(key)
    x = jax.random.normal(kx, (batch, seq, in_dim), dtype=jnp.float32)

    # --- f32 compute path (v5e-friendly; strict check vs reference) ---------
    params_f32, raw, cfg_f32 = init_cond_dist_params(
        kp, in_dim, hid_dim, out_dim, family, compute_dtype=jnp.float32)
    out_f32 = cond_dist_forward(x, params_f32, cfg_f32)
    jax.block_until_ready(out_f32["loc"])
    jax.block_until_ready(out_f32["scale"])

    ref = cond_dist_reference(x, raw, cfg_f32)
    assert out_f32["loc"].shape == (batch, seq, out_dim), out_f32["loc"].shape
    assert out_f32["scale"].shape == (batch, seq, out_dim), out_f32["scale"].shape
    assert jnp.allclose(out_f32["loc"], ref["loc"], atol=1e-5, rtol=1e-5), \
        "f32 loc mismatch vs reference"
    assert jnp.allclose(out_f32["scale"], ref["scale"], atol=1e-4, rtol=1e-4), \
        "f32 scale mismatch vs reference"

    # --- bf16 MXU-input path (recommended for v6e/v7x; loose check) ---------
    params_bf16, _, cfg_bf16 = init_cond_dist_params(
        kp, in_dim, hid_dim, out_dim, family, compute_dtype=jnp.bfloat16)
    out_bf16 = cond_dist_forward(x, params_bf16, cfg_bf16)
    jax.block_until_ready(out_bf16["loc"])
    assert jnp.allclose(out_bf16["loc"], ref["loc"], atol=1e-1, rtol=5e-2), \
        "bf16 loc mismatch vs reference"
    assert jnp.allclose(out_bf16["scale"], ref["scale"], atol=1e-1, rtol=5e-2), \
        "bf16 scale mismatch vs reference"

    # --- deterministic family path (n_param=1, no softplus epilogue) --------
    params_det, raw_det, cfg_det = init_cond_dist_params(
        kp, in_dim, hid_dim, out_dim, "deterministic", compute_dtype=jnp.float32)
    out_det = cond_dist_forward(x, params_det, cfg_det)
    jax.block_until_ready(out_det["loc"])
    ref_det = cond_dist_reference(x, raw_det, cfg_det)
    assert jnp.allclose(out_det["loc"], ref_det["loc"], atol=1e-5, rtol=1e-5), \
        "deterministic loc mismatch vs reference"

    print("KERNEL_OK")
</pallas_src>

<mosaic_0001>
module attributes {stable_mosaic.version = 11 : i64} {
  func.func @_mlp_kernel(%arg0: i32, %arg1: memref<16x128xf32, #tpu.memory_space<vmem>>, %arg2: memref<128x128xf32, #tpu.memory_space<vmem>>, %arg3: memref<1x128xf32, #tpu.memory_space<vmem>>, %arg4: memref<128x128xf32, #tpu.memory_space<vmem>>, %arg5: memref<1x128xf32, #tpu.memory_space<vmem>>, %arg6: memref<16x128xf32, #tpu.memory_space<vmem>>) attributes {dimension_semantics = [#tpu.dimension_semantics<parallel>], iteration_bounds = array<i64: 1>, scalar_prefetch = 0 : i64, scratch_operands = 0 : i64, tpu.core_type = #tpu.core_type<tc>, window_params = [{transform_indices = @transform_0, window_bounds = array<i64: 16, 128>}, {pipeline_mode = #tpu.pipeline_mode<synchronous>, transform_indices = @transform_1, window_bounds = array<i64: 128, 128>}, {pipeline_mode = #tpu.pipeline_mode<synchronous>, transform_indices = @transform_2, window_bounds = array<i64: 1, 128>}, {pipeline_mode = #tpu.pipeline_mode<synchronous>, transform_indices = @transform_3, window_bounds = array<i64: 128, 128>}, {pipeline_mode = #tpu.pipeline_mode<synchronous>, transform_indices = @transform_4, window_bounds = array<i64: 1, 128>}, {transform_indices = @transform_5, window_bounds = array<i64: 16, 128>}]} {
    %c0 = arith.constant 0 : index
    %c0_0 = arith.constant 0 : index
    %0 = vector.load %arg1[%c0, %c0_0] : memref<16x128xf32, #tpu.memory_space<vmem>>, vector<16x128xf32>
    %c0_1 = arith.constant 0 : index
    %c0_2 = arith.constant 0 : index
    %1 = vector.load %arg2[%c0_1, %c0_2] : memref<128x128xf32, #tpu.memory_space<vmem>>, vector<128x128xf32>
    %cst = arith.constant dense<0.000000e+00> : vector<16x128xf32>
    %2 = tpu.matmul %0, %1, %cst {dimension_numbers = #tpu.dot_dimension_numbers<[1], [0], [0], [1], [0, 0, 1, 1], [], []>} : vector<16x128xf32>, vector<128x128xf32>, vector<16x128xf32> -> vector<16x128xf32>
    %c0_3 = arith.constant 0 : index
    %c0_4 = arith.constant 0 : index
    %3 = vector.load %arg3[%c0_3, %c0_4] : memref<1x128xf32, #tpu.memory_space<vmem>>, vector<1x128xf32>
    %4 = vector.broadcast %3 : vector<1x128xf32> to vector<16x128xf32>
    %5 = arith.addf %2, %4 : vector<16x128xf32>
    %cst_5 = arith.constant 0.000000e+00 : f32
    %6 = vector.broadcast %cst_5 : f32 to vector<16x128xf32>
    %7 = arith.maximumf %5, %6 : vector<16x128xf32>
    %c0_6 = arith.constant 0 : index
    %c0_7 = arith.constant 0 : index
    %8 = vector.load %arg4[%c0_6, %c0_7] : memref<128x128xf32, #tpu.memory_space<vmem>>, vector<128x128xf32>
    %cst_8 = arith.constant dense<0.000000e+00> : vector<16x128xf32>
    %9 = tpu.matmul %7, %8, %cst_8 {dimension_numbers = #tpu.dot_dimension_numbers<[1], [0], [0], [1], [0, 0, 1, 1], [], []>} : vector<16x128xf32>, vector<128x128xf32>, vector<16x128xf32> -> vector<16x128xf32>
    %c0_9 = arith.constant 0 : index
    %c0_10 = arith.constant 0 : index
    %10 = vector.load %arg5[%c0_9, %c0_10] : memref<1x128xf32, #tpu.memory_space<vmem>>, vector<1x128xf32>
    %11 = vector.broadcast %10 : vector<1x128xf32> to vector<16x128xf32>
    %12 = arith.addf %9, %11 : vector<16x128xf32>
    %cst_11 = arith.constant 0.000000e+00 : f32
    %13 = vector.broadcast %cst_11 : f32 to vector<16x128xf32>
    %14 = arith.maximumf %12, %13 : vector<16x128xf32>
    %15 = math.absf %12 : vector<16x128xf32>
    %cst_12 = arith.constant 0.000000e+00 : f32
    %16 = vector.broadcast %cst_12 : f32 to vector<16x128xf32>
    %17 = arith.subf %16, %15 : vector<16x128xf32>
    %18 = math.exp %17 : vector<16x128xf32>
    %cst_13 = arith.constant 1.000000e+00 : f32
    %19 = vector.broadcast %cst_13 : f32 to vector<16x128xf32>
    %20 = arith.addf %19, %18 : vector<16x128xf32>
    %21 = math.log %20 : vector<16x128xf32>
    %22 = arith.addf %14, %21 : vector<16x128xf32>
    %cst_14 = arith.constant 9.99999974E-6 : f32
    %23 = vector.broadcast %cst_14 : f32 to vector<16x128xf32>
    %24 = arith.addf %22, %23 : vector<16x128xf32>
    %25 = tpu.iota {dimensions = array<i32: 1>} : vector<16x128xi32>
    %c8_i32 = arith.constant 8 : i32
    %26 = vector.broadcast %c8_i32 : i32 to vector<16x128xi32>
    %27 = arith.cmpi sge, %25, %26 : vector<16x128xi32>
    %c16_i32 = arith.constant 16 : i32
    %28 = vector.broadcast %c16_i32 : i32 to vector<16x128xi32>
    %29 = arith.cmpi slt, %25, %28 : vector<16x128xi32>
    %30 = arith.andi %27, %29 : vector<16x128xi1>
    %31 = arith.select %30, %24, %12 : vector<16x128xi1>, vector<16x128xf32>
    %c0_15 = arith.constant 0 : index
    %c0_16 = arith.constant 0 : index
    %32 = vector.load %arg6[%c0_15, %c0_16] : memref<16x128xf32, #tpu.memory_space<vmem>>, vector<16x128xf32>
    tpu.vector_store %arg6[%c0_15, %c0_16], %31 {strides = array<i32>} : memref<16x128xf32, #tpu.memory_space<vmem>>, vector<16x128xf32>,
    return
  }
  func.func @transform_0(%arg0: i32) -> (i32, i32) {
    %c0_i32 = arith.constant 0 : i32
    %c0_i32_0 = arith.constant 0 : i32
    return %arg0, %c0_i32 : i32, i32
  }
  func.func @transform_1(%arg0: i32) -> (i32, i32) {
    %c0_i32 = arith.constant 0 : i32
    %c0_i32_0 = arith.constant 0 : i32
    %c0_i32_1 = arith.constant 0 : i32
    return %c0_i32, %c0_i32_0 : i32, i32
  }
  func.func @transform_2(%arg0: i32) -> (i32, i32) {
    %c0_i32 = arith.constant 0 : i32
    %c0_i32_0 = arith.constant 0 : i32
    %c0_i32_1 = arith.constant 0 : i32
    return %c0_i32, %c0_i32_0 : i32, i32
  }
  func.func @transform_3(%arg0: i32) -> (i32, i32) {
    %c0_i32 = arith.constant 0 : i32
    %c0_i32_0 = arith.constant 0 : i32
    %c0_i32_1 = arith.constant 0 : i32
    return %c0_i32, %c0_i32_0 : i32, i32
  }
  func.func @transform_4(%arg0: i32) -> (i32, i32) {
    %c0_i32 = arith.constant 0 : i32
    %c0_i32_0 = arith.constant 0 : i32
    %c0_i32_1 = arith.constant 0 : i32
    return %c0_i32, %c0_i32_0 : i32, i32
  }
  func.func @transform_5(%arg0: i32) -> (i32, i32) {
    %c0_i32 = arith.constant 0 : i32
    %c0_i32_0 = arith.constant 0 : i32
    return %arg0, %c0_i32 : i32, i32
  }
}

</mosaic_0001>

<bundles_post_ra>
// kernel: tpu_custom_call.1
= control target key start
LH: loop header
LB: loop body
LE: loop exit
PB: predicated region body
PF: predicated region fallthrough
CT: control target
= control target key end

     0   :  { %10 = vsyncpa [#allocation3], 0  ;;  %s698_s0 = inlined_call_operand.hbm [shape: f32[16,128], index: 0, kind: input, shape index: {}]   ;;  %s699_s1 = inlined_call_operand.hbm [shape: f32[128,128], index: 1, kind: input, shape index: {}]   ;;  %s700_s2 = inlined_call_operand.vmem [shape: f32[1,128], index: 2, kind: input, shape index: {}]   ;;  %s701_s3 = inlined_call_operand.hbm [shape: f32[128,128], index: 3, kind: input, shape index: {}]   ;;  %s702_s4 = inlined_call_operand.vmem [shape: f32[1,128], index: 4, kind: input, shape index: {}]   ;;  %s703_s5 = inlined_call_operand.hbm [shape: f32[16,128], index: 5, kind: output, shape index: {}]  }
   0x1   :  { %11 = vsyncpa [#allocation6], 0 }
   0x2   :  { %12 = vsyncpa [#allocation4], 0  ;;  %s589_s18 = smov [#allocation5]   ;;  %s590_s20 = smov [#allocation2]  }
   0x3   :  { %s30_s19 = sshll.u32 %s589_s18, 4  ;;  %s18_s21 = sshll.u32 %s590_s20, 4  ;;  %s31_s19 = int_to_ptr.vmem [resolvable:$true] %s30_s19  ;;  %s625_s21 = int_to_ptr.vmem [resolvable:$true] %s18_s21 }
   0x4   :  { %s495_s24 = scalar_lea.hbm %s699_s1, 2048 }
   0x5   :  { %p496_p0 = scmp.ne.s32.totalorder %s699_s1, %s495_s24  ;;  %p499_p1 = scmp.lt.u32.totalorder %s495_s24, %s699_s1 }
   0x7   :  { %p501_p2 = pnand %p499_p1, %p496_p0 }
   0x9   :  { %504 = shalt.err (!%p501_p2)
}
   0xa   :  { %s505_s29 = scalar_lea.vmem %s31_s19, 2048  ;;  %p510_p4 = scmp.lt.s32.totalorder %s31_s19, %s31_s19 }
   0xb   :  { %p506_p3 = scmp.ne.s32.totalorder %s31_s19, %s505_s29  ;;  %p511_p5 = scmp.lt.s32.totalorder %s505_s29, %s505_s29 }
   0xd   :  { %p512_p6 = por %p511_p5, %p510_p4 }
   0xf   :  { %p513_p7 = pnand %p512_p6, %p506_p3 }
  0x11   :  { %516 = shalt.err (!%p513_p7)
}
  0x12   :  { %s591_s30 = smov 128   ;;  %s592_s6 = smov 8  }
  0x13   :  { %36 = dma.hbm_to_vmem [thread:$0]  %s699_s1, 2048, %s31_s19, [#allocation6], %s591_s30, %s591_s30, %s592_s6  }
  0x14   :  { %s517_s11 = scalar_lea.hbm %s698_s0, 256 }
  0x15   :  { %p518_p8 = scmp.ne.s32.totalorder %s698_s0, %s517_s11  ;;  %p521_p9 = scmp.lt.u32.totalorder %s517_s11, %s698_s0 }
  0x17   :  { %p523_p10 = pnand %p521_p9, %p518_p8 }
  0x19   :  { %526 = shalt.err (!%p523_p10)
}
  0x1a   :  { %s527_s16 = scalar_lea.vmem %s625_s21, 256  ;;  %p532_p12 = scmp.lt.s32.totalorder %s625_s21, %s625_s21 }
  0x1b   :  { %p528_p11 = scmp.ne.s32.totalorder %s625_s21, %s527_s16  ;;  %p533_p13 = scmp.lt.s32.totalorder %s527_s16, %s527_s16 }
  0x1d   :  { %p534_p0 = por %p533_p13, %p532_p12 }
  0x1f   :  { %p535_p1 = pnand %p534_p0, %p528_p11 }
  0x21   :  { %538 = shalt.err (!%p535_p1)
}
  0x22   :  { %24 = dma.hbm_to_vmem [thread:$0]  %s698_s0, 256, %s625_s21, [#allocation3], %s591_s30, %s591_s30, %s592_s6  }
  0x23   :  { %s593_s18 = smov [#allocation7]   ;;  %s539_s23 = scalar_lea.hbm %s701_s3, 2048 }
  0x24   :  { %s44_s19 = sshll.u32 %s593_s18, 4  ;;  %p540_p2 = scmp.ne.s32.totalorder %s701_s3, %s539_s23  ;;  %s45_s19 = int_to_ptr.vmem [resolvable:$true] %s44_s19 }
  0x25   :  { %p543_p3 = scmp.lt.u32.totalorder %s539_s23, %s701_s3 }
  0x27   :  { %p545_p4 = pnand %p543_p3, %p540_p2 }
  0x29   :  { %548 = shalt.err (!%p545_p4)
}
  0x2a   :  { %s549_s28 = scalar_lea.vmem %s45_s19, 2048  ;;  %p554_p6 = scmp.lt.s32.totalorder %s45_s19, %s45_s19 }
  0x2b   :  { %p550_p5 = scmp.ne.s32.totalorder %s45_s19, %s549_s28  ;;  %p555_p7 = scmp.lt.s32.totalorder %s549_s28, %s549_s28 }
  0x2d   :  { %p556_p8 = por %p555_p7, %p554_p6 }
  0x2f   :  { %p557_p9 = pnand %p556_p8, %p550_p5 }
  0x31   :  { %560 = shalt.err (!%p557_p9)
}
  0x32   :  { %50 = dma.hbm_to_vmem [thread:$0]  %s701_s3, 2048, %s45_s19, [#allocation6], %s591_s30, %s591_s30, %s592_s6  }
  0x33   :  { %583 = dma.done.wait [#allocation3], 256  }
  0x34   :  { %584 = vsyncadd [#allocation3], 4294967040 }
  0x35   :  { %585 = dma.done.wait [#allocation6], 4096  }
  0x36   :  { %586 = vsyncadd [#allocation6], 4294963200  ;;  %v64_v0 = vld [vmem:[#allocation5] sm:$0xff]  ;;  %v65_v1 = vld [vmem:[#allocation5 + $0x8] sm:$0xff] }
  0x37   :  { %v66_v2 = vld [vmem:[#allocation5 + $0x10] sm:$0xff]  ;;  %v417_v3 = vpack.c.bf16 %v65_v1, %v64_v0  ;;  %v67_v4 = vld [vmem:[#allocation5 + $0x18] sm:$0xff]  ;;  %v68_v6 = vld [vmem:[#allocation5 + $0x20] sm:$0xff] }
  0x38   :  { %v421_v5 = vpack.c.bf16 %v67_v4, %v66_v2  ;;  %v69_v7 = vld [vmem:[#allocation5 + $0x28] sm:$0xff]  ;;  %v70_v9 = vld [vmem:[#allocation5 + $0x30] sm:$0xff]  ;;  %v71_v10 = vld [vmem:[#allocation5 + $0x38] sm:$0xff] }
  0x39   :  { %418 = vmatprep.subr.bf16.mxu0 %v417_v3  ;;  %v425_v8 = vpack.c.bf16 %v69_v7, %v68_v6  ;;  %v62_v11 = vld [vmem:[#allocation2] sm:$0xff]  ;;  %v164_v12 = vld [vmem:[#allocation7] sm:$0xff]  ;;  %v165_v13 = vld [vmem:[#allocation7 + $0x8] sm:$0xff]  ;;  %v429_v20 = vpack.c.bf16 %v71_v10, %v70_v9 }
  0x3a   :  { %420 = vmatpush3.bf16.msra.mxu0 %v417_v3  ;;  %379 = vmatprep.mubr.f32.mxu0 %v62_v11  ;;  %v166_v14 = vld [vmem:[#allocation7 + $0x10] sm:$0xff]  ;;  %v449_v15 = vpack.c.bf16 %v165_v13, %v164_v12  ;;  %v167_v16 = vld [vmem:[#allocation7 + $0x18] sm:$0xff]  ;;  %v168_v18 = vld [vmem:[#allocation7 + $0x20] sm:$0xff] }
  0x3b   :  { %422 = vmatprep.subr.bf16.mxu0 %v421_v5  ;;  %v453_v17 = vpack.c.bf16 %v167_v16, %v166_v14  ;;  %v169_v19 = vld [vmem:[#allocation7 + $0x28] sm:$0xff]  ;;  %v72_v21 = vld [vmem:[#allocation5 + $0x40] sm:$0xff]  ;;  %v170_v24 = vld [vmem:[#allocation7 + $0x30] sm:$0xff] }
  0x3c   :  { %450 = vmatprep.subr.bf16.mxu1 %v449_v15  ;;  %v73_v22 = vld [vmem:[#allocation5 + $0x48] sm:$0xff]  ;;  %v457_v23 = vpack.c.bf16 %v169_v19, %v168_v18  ;;  %v171_v25 = vld [vmem:[#allocation7 + $0x38] sm:$0xff]  ;;  %v74_v27 = vld [vmem:[#allocation5 + $0x50] sm:$0xff] }
  0x3d   :  { %452 = vmatpush3.bf16.msra.mxu1 %v449_v15  ;;  %v433_v26 = vpack.c.bf16 %v73_v22, %v72_v21  ;;  %v75_v28 = vld [vmem:[#allocation5 + $0x58] sm:$0xff]  ;;  %v461_v29 = vpack.c.bf16 %v171_v25, %v170_v24  ;;  %v172_v30 = vld [vmem:[#allocation7 + $0x40] sm:$0xff]  ;;  %v173_v31 = vld [vmem:[#allocation7 + $0x48] sm:$0xff] }
  0x3e   :  { %424 = vmatpush3.bf16.msra.mxu0 %v421_v5  ;;  %454 = vmatprep.subr.bf16.mxu1 %v453_v17  ;;  %v437_v32 = vpack.c.bf16 %v75_v28, %v74_v27  ;;  %v76_v33 = vld [vmem:[#allocation5 + $0x60] sm:$0xff]  ;;  %v77_v34 = vld [vmem:[#allocation5 + $0x68] sm:$0xff]  ;;  %v465_v35 = vpack.c.bf16 %v173_v31, %v172_v30  ;;  %v174_v36 = vld [vmem:[#allocation7 + $0x50] sm:$0xff] }
  0x3f   :  { %426 = vmatprep.subr.bf16.mxu0 %v425_v8  ;;  %v175_v37 = vld [vmem:[#allocation7 + $0x58] sm:$0xff]  ;;  %v441_v38 = vpack.c.bf16 %v77_v34, %v76_v33  ;;  %v78_v39 = vld [vmem:[#allocation5 + $0x70] sm:$0xff]  ;;  %v176_v42 = vld [vmem:[#allocation7 + $0x60] sm:$0xff] }
  0x40   :  { %v79_v40 = vld [vmem:[#allocation5 + $0x78] sm:$0xff]  ;;  %v469_v41 = vpack.c.bf16 %v175_v37, %v174_v36  ;;  %v177_v43 = vld [vmem:[#allocation7 + $0x68] sm:$0xff]  ;;  %v178_v47 = vld [vmem:[#allocation7 + $0x70] sm:$0xff] }
  0x41   :  { %456 = vmatpush3.bf16.msra.mxu1 %v453_v17  ;;  %v445_v44 = vpack.c.bf16 %v79_v40, %v78_v39  ;;  %v473_v45 = vpack.c.bf16 %v177_v43, %v176_v42  ;;  %v63_v46 = vld [vmem:[#allocation2 + $0x8] sm:$0xff]  ;;  %v309_v50 = vld [vmem:[%s700_s2] ss:$0 sm:$0xff]  ;;  %s594_s2 = smov [#allocation8]  }
  0x42   :  { %428 = vmatpush3.bf16.msra.mxu0 %v425_v8  ;;  %458 = vmatprep.subr.bf16.mxu1 %v457_v23  ;;  %v179_v48 = vld [vmem:[#allocation7 + $0x78] sm:$0xff]  ;;  %v310_v57 = vld [vmem:[%s702_s4] ss:$0 sm:$0xff]  ;;  %v282_v8 = vlaneseq  ;;  %s296_s4 = sshll.u32 %s594_s2, 4  ;;  %s297_s4 = int_to_ptr.vmem [resolvable:$true] %s296_s4 }
  0x43   :  { %430 = vmatprep.subr.bf16.mxu0 %v429_v20  ;;  %v477_v49 = vpack.c.bf16 %v179_v48, %v178_v47  ;;  %s561_s9 = scalar_lea.vmem %s297_s4, 256  ;;  %p566_p11 = scmp.lt.s32.totalorder %s297_s4, %s297_s4 }
  0x44   :  { %v283_v9 = vand.u32 127, %v282_v8  ;;  %p562_p10 = scmp.ne.s32.totalorder %s297_s4, %s561_s9  ;;  %p567_p12 = scmp.lt.s32.totalorder %s561_s9, %s561_s9 }
  0x45   :  { %460 = vmatpush3.bf16.msra.mxu1 %v457_v23 }
  0x46   :  { %432 = vmatpush3.bf16.msra.mxu0 %v429_v20  ;;  %462 = vmatprep.subr.bf16.mxu1 %v461_v29  ;;  %vm284_vm0 = vcmp.ge.s32.totalorder %v283_v9, 8  ;;  %vm285_vm1 = vcmp.lt.s32.totalorder %v283_v9, 16  ;;  %p568_p13 = por %p567_p12, %p566_p11 }
  0x47   :  { %434 = vmatprep.subr.bf16.mxu0 %v433_v26  ;;  %vm286_vm2 = vmand %vm284_vm0, %vm285_vm1 }
  0x48   :  { %p569_p0 = pnand %p568_p13, %p562_p10 }
  0x49   :  { %464 = vmatpush3.bf16.msra.mxu1 %v461_v29 }
  0x4a   :  { %436 = vmatpush3.bf16.msra.mxu0 %v433_v26  ;;  %466 = vmatprep.subr.bf16.mxu1 %v465_v35 }
  0x4b   :  { %438 = vmatprep.subr.bf16.mxu0 %v437_v32 }
  0x4d   :  { %468 = vmatpush3.bf16.msra.mxu1 %v465_v35 }
  0x4e   :  { %440 = vmatpush3.bf16.msra.mxu0 %v437_v32  ;;  %470 = vmatprep.subr.bf16.mxu1 %v469_v41 }
  0x4f   :  { %442 = vmatprep.subr.bf16.mxu0 %v441_v38 }
  0x51   :  { %472 = vmatpush3.bf16.msra.mxu1 %v469_v41 }
  0x52   :  { %444 = vmatpush3.bf16.msra.mxu0 %v441_v38  ;;  %474 = vmatprep.subr.bf16.mxu1 %v473_v45 }
  0x53   :  { %446 = vmatprep.subr.bf16.mxu0 %v445_v44 }
  0x55   :  { %476 = vmatpush3.bf16.msra.mxu1 %v473_v45 }
  0x56   :  { %448 = vmatpush3.bf16.msra.mxu0 %v445_v44  ;;  %478 = vmatprep.subr.bf16.mxu1 %v477_v49 }
  0x59   :  { %380 = vmatmul.mubr.f32.vlgmr.msra.gmra.mrb[0].mxu0 %v63_v46  ;;  %480 = vmatpush3.bf16.msra.mxu1 %v477_v49 }
 0x12c   :  { %v381_v51 = vpop.f32.mrb[0].mxu0 }
 0x12d   :  { %v159_v52 = vadd.f32 %v381_v51, %v309_v50  ;;  %v153_v53 = vpop.f32.mrb[1].mxu0 }
 0x12e   :  { %v154_v54 = vadd.f32 %v309_v50, %v153_v53 }
 0x12f   :  { %v163_v56 = vmax.f32 %v159_v52, 0.0 }
 0x130   :  { %v162_v55 = vmax.f32 %v154_v54, 0.0 }
 0x132   :  { %414 = vmatprep.mubr.f32.mxu1 %v162_v55 }
 0x133   :  { %415 = vmatmul.mubr.f32.vlgmr.msra.gmra.mrb[0].mxu1 %v163_v56 }
 0x206   :  { %v416_v58 = vpop.f32.mrb[0].mxu1 }
 0x207   :  { %v259_v59 = vadd.f32 %v416_v58, %v310_v57  ;;  %v253_v60 = vpop.f32.mrb[1].mxu1 }
 0x208   :  { %v254_v61 = vadd.f32 %v310_v57, %v253_v60 }
 0x209   :  { %v265_v62 = vand.u32 2147483647, %v259_v59  ;;  %v263_v12 = vmax.f32 %v259_v59, 0.0 }
 0x20a   :  { %v264_v63 = vand.u32 2147483647, %v254_v61  ;;  %v262_v14 = vmax.f32 %v254_v61, 0.0 }
 0x20b   :  { %v267_v0 = vsub.f32 0.0, %v265_v62 }
 0x20c   :  { %v266_v1 = vsub.f32 0.0, %v264_v63 }
 0x20d   :  { %v270_v2 = vmul.f32 1.442695, %v267_v0 }
 0x20e   :  { %v268_v3 = vmul.f32 1.442695, %v266_v1 }
 0x20f   :  { %487 = vpow2.f32 %v270_v2 }
 0x210   :  { %489 = vpow2.f32 %v268_v3 }
 0x219   :  { %v488_v4 = vpop.eup %487 }
 0x21a   :  { %v490_v5 = vpop.eup %489  ;;  %v273_v6 = vadd.f32 1.0, %v488_v4 }
 0x21b   :  { %v272_v7 = vadd.f32 1.0, %v490_v5 }
 0x21c   :  { %491 = vlog2.f32 %v273_v6 }
 0x21d   :  { %493 = vlog2.f32 %v272_v7 }
 0x226   :  { %v492_v10 = vpop.eup %491 }
 0x227   :  { %v494_v11 = vpop.eup %493  ;;  %v277_v13 = vmul.f32 0.6931472, %v492_v10 }
 0x228   :  { %v275_v15 = vmul.f32 0.6931472, %v494_v11 }
 0x229   :  { %v279_v16 = vadd.f32 %v277_v13, %v263_v12 }
 0x22a   :  { %v278_v17 = vadd.f32 %v275_v15, %v262_v14 }
 0x22b   :  { %v281_v18 = vadd.f32 1e-05, %v279_v16 }
 0x22c   :  { %v280_v19 = vadd.f32 1e-05, %v278_v17 }
 0x22d   :  { %v288_v20 = vsel %vm286_vm2, %v281_v18, %v259_v59 }
 0x22e   :  { %v287_v21 = vsel %vm286_vm2, %v280_v19, %v254_v61  ;;  %290 = vst [vmem:[#allocation8 + $0x8] sm:$0xff] %v288_v20 }
 0x22f   :  { %289 = vst [vmem:[#allocation8] sm:$0xff] %v287_v21 }
 0x230   :  { %572 = shalt.err (!%p569_p0)
}
 0x231   :  { %s573_s12 = scalar_lea.hbm %s703_s5, 256 }
 0x232   :  { %p574_p1 = scmp.ne.s32.totalorder %s703_s5, %s573_s12  ;;  %p577_p2 = scmp.lt.u32.totalorder %s573_s12, %s703_s5 }
 0x234   :  { %p579_p3 = pnand %p577_p2, %p574_p1 }
 0x236   :  { %582 = shalt.err (!%p579_p3)
}
 0x237   :  { %302 = dma.vmem_to_hbm [thread:$0]  %s297_s4, 256, %s703_s5, [#allocation4], %s591_s30, %s591_s30, %s592_s6  }
 0x238   :  { %587 = dma.done.wait [#allocation4], 256  }
 0x239   :  { %588 = vsyncadd [#allocation4], 4294967040 }
 0x23a   :  { %306 = vsyncpa [#allocation3], 1 }
 0x23b   :  { %307 = vsyncpa [#allocation6], 1 }
 0x23c   :  { %308 = vsyncpa [#allocation4], 1 }

</bundles_post_ra>
